<compile_context>
chip_gen: v5e
topology: v5e:2x2
jax: 0.10.0
libtpu: 0.0.40
codegen_flags: <defaults>
</compile_context>

<pallas_src>
import functools

import jax
import jax.numpy as jnp
from jax import lax
from jax.experimental import pallas as pl
from jax.experimental.pallas import tpu as pltpu


def _round_up(x, m):
    return ((x + m - 1) // m) * m


def _sublane(itemsize):
    # Sublane packing: 8 rows for 4-byte, 16 for 2-byte, 32 for 1-byte dtypes.
    return {4: 8, 2: 16, 1: 32}.get(itemsize, 8)


@functools.lru_cache(maxsize=1)
def _vmem_capacity_bytes():
    try:
        return int(pltpu.get_tpu_info().vmem_capacity_bytes)
    except Exception:
        return 64 * 1024 * 1024  # conservative fallback (v7x per-TC VMEM)


def _largest_aligned_divisor(dp, max_tk):
    """Largest multiple of 128 dividing dp (itself a multiple of 128), <= max_tk."""
    q = dp // 128
    best = 128
    for d in range(1, q + 1):
        cand = 128 * d
        if cand > max_tk:
            break
        if q % d == 0:
            best = cand
    return best


def _select_tiles(np_, mp_, d, isx, isy, iso, acc_needed, budget, tn_max, tm_max, sub):
    """Pick (tn, tm, tk, multi_k) under the VMEM budget, preferring large
    output tiles (HBM arithmetic intensity) and a collapsed K axis."""
    tn = min(tn_max, np_)
    tm = min(tm_max, mp_)
    while True:
        out_bytes = 2 * tn * tm * iso                 # double-buffered output
        # (a) Single K block over the full feature dim (preferred).
        if 2 * d * (tn * isx + tm * isy) + out_bytes <= budget:
            return tn, tm, d, False
        # (b) Split K: tile must be a 128-multiple divisor of the padded D.
        acc_bytes = tn * tm * 4 if acc_needed else 0
        per_k = 2 * (tn * isx + tm * isy)             # bytes per unit of tk
        avail = budget - out_bytes - acc_bytes
        if avail >= 128 * per_k:
            dp = _round_up(d, 128)
            tk = _largest_aligned_divisor(dp, avail // per_k)
            return tn, tm, tk, True
        # (c) Shrink the output tile and retry (essentially never reached).
        if tm >= tn and tm > 128:
            tm = max(128, _round_up(tm // 2, 128))
        elif tn > sub:
            tn = max(sub, _round_up(tn // 2, sub))
        else:
            if d <= 128:
                return tn, tm, d, False
            return tn, tm, 128, True


def _dot_kernel_single(x_ref, y_ref, o_ref):
    # x_ref: (tn, D), y_ref: (tm, D). Contract the shared feature axis
    # directly (== x_tile @ y_tile.T) -- no in-kernel transpose.
    o_ref[...] = lax.dot_general(
        x_ref[...], y_ref[...],
        dimension_numbers=(((1,), (1,)), ((), ())),
        preferred_element_type=jnp.float32,
    ).astype(o_ref.dtype)


def _dot_kernel_multi_f32(x_ref, y_ref, o_ref):
    # f32 output: accumulate directly into the resident output block.
    @pl.when(pl.program_id(2) == 0)
    def _():
        o_ref[...] = jnp.zeros_like(o_ref)

    o_ref[...] += lax.dot_general(
        x_ref[...], y_ref[...],
        dimension_numbers=(((1,), (1,)), ((), ())),
        preferred_element_type=jnp.float32,
    )


def _dot_kernel_multi_acc(x_ref, y_ref, o_ref, acc_ref):
    # Narrow output dtype: accumulate in f32 VMEM scratch, cast at the end.
    k = pl.program_id(2)

    @pl.when(k == 0)
    def _():
        acc_ref[...] = jnp.zeros_like(acc_ref)

    acc_ref[...] += lax.dot_general(
        x_ref[...], y_ref[...],
        dimension_numbers=(((1,), (1,)), ((), ())),
        preferred_element_type=jnp.float32,
    )

    @pl.when(k == pl.num_programs(2) - 1)
    def _():
        o_ref[...] = acc_ref[...].astype(o_ref.dtype)


@functools.partial(jax.jit, static_argnames=("tile_n", "tile_m"))
def dot_scorer(x, y, *, tile_n=1024, tile_m=1024):
    """scores[i, j] = sum_d x[i, d] * y[j, d]   (i.e. x @ y.T)."""
    N, D = x.shape
    M, Dy = y.shape
    assert D == Dy, "feature dims must match"

    out_dtype = jnp.result_type(x.dtype, y.dtype)
    isx = x.dtype.itemsize
    isy = y.dtype.itemsize
    iso = jnp.dtype(out_dtype).itemsize
    acc_needed_if_split = jnp.dtype(out_dtype) != jnp.dtype(jnp.float32)
    sub = _sublane(isx)

    # Hardware-alignment padding only (not up to full tile multiples).
    Np = _round_up(N, sub)      # sublane packing for x rows
    Mp = _round_up(M, 128)      # lane-dense output columns

    # Generation-aware VMEM budget (v7x: 64 MiB/TC; v5e/v6e: 128 MiB).
    cap = _vmem_capacity_bytes()
    budget = min(cap * 3 // 4, 96 * 1024 * 1024)

    tn, tm, tk, multi_k = _select_tiles(
        Np, Mp, D, isx, isy, iso, acc_needed_if_split, budget, tile_n, tile_m, sub)

    # Keep >= 2 blocks along a parallel axis so v7x's second TensorCore has
    # work; harmless on single-core chips.
    if pl.cdiv(Np, tn) == 1 and pl.cdiv(Mp, tm) == 1:
        if Mp >= 256:
            tm = _round_up(Mp // 2, 128)
        elif Np >= 2 * sub:
            tn = _round_up(Np // 2, sub)

    # The contraction axis must never read garbage: pad D (with zeros) to the
    # 128-aligned extent only when K is split (tk then divides Dp exactly).
    Dp = _round_up(D, 128) if multi_k else D

    if (Np, Dp) != (N, D):
        x = jnp.pad(x, ((0, Np - N), (0, Dp - D)))
    if (Mp, Dp) != (M, D):
        y = jnp.pad(y, ((0, Mp - M), (0, Dp - D)))

    gn = pl.cdiv(Np, tn)
    gm = pl.cdiv(Mp, tm)

    if multi_k:
        gk = Dp // tk
        grid = (gn, gm, gk)
        in_specs = [
            pl.BlockSpec((tn, tk), lambda i, j, k: (i, k)),
            pl.BlockSpec((tm, tk), lambda i, j, k: (j, k)),
        ]
        out_specs = pl.BlockSpec((tn, tm), lambda i, j, k: (i, j))
        dims = ("parallel", "parallel", "arbitrary")
        if acc_needed_if_split:
            kernel = _dot_kernel_multi_acc
            scratch = (pltpu.VMEM((tn, tm), jnp.float32),)
            acc_bytes = tn * tm * 4
        else:
            kernel = _dot_kernel_multi_f32
            scratch = ()
            acc_bytes = 0
        x_bytes = gm * Np * Dp * isx
        y_bytes = gn * Mp * Dp * isy
    else:
        grid = (gn, gm)
        in_specs = [
            pl.BlockSpec((tn, D), lambda i, j: (i, 0)),
            pl.BlockSpec((tm, D), lambda i, j: (j, 0)),
        ]
        out_specs = pl.BlockSpec((tn, tm), lambda i, j: (i, j))
        dims = ("parallel", "parallel")
        kernel = _dot_kernel_single
        scratch = ()
        acc_bytes = 0
        # x block index (i, 0) is constant across the inner j axis -> fetched
        # once; y is re-streamed gn times.
        x_bytes = Np * D * isx
        y_bytes = gn * Mp * D * isy

    tk_eff = tk if multi_k else D
    footprint = 2 * tk_eff * (tn * isx + tm * isy) + 2 * tn * tm * iso + acc_bytes
    vmem_limit = int(min(max(footprint * 5 // 4 + (4 << 20), 32 << 20),
                         max(cap - (8 << 20), 32 << 20)))

    flops = 2 * Np * Mp * Dp
    bytes_accessed = x_bytes + y_bytes + Np * Mp * iso

    out = pl.pallas_call(
        kernel,
        out_shape=jax.ShapeDtypeStruct((Np, Mp), out_dtype),
        grid_spec=pltpu.PrefetchScalarGridSpec(
            num_scalar_prefetch=0,
            grid=grid,
            in_specs=in_specs,
            out_specs=out_specs,
            scratch_shapes=scratch,
        ),
        compiler_params=pltpu.CompilerParams(
            dimension_semantics=dims,
            vmem_limit_bytes=vmem_limit,
        ),
        cost_estimate=pl.CostEstimate(
            flops=flops, transcendentals=0, bytes_accessed=bytes_accessed),
    )(x, y)

    if (Np, Mp) != (N, M):
        out = out[:N, :M]
    return out


if __name__ == "__main__":
    key = jax.random.PRNGKey(0)
    kx, ky, kx2, ky2 = jax.random.split(key, 4)

    # Small shapes consistent with DotScorer: N query rows, M candidates, D hidden.
    N, M, D = 8, 16, 32
    x = jax.random.normal(kx, (N, D), dtype=jnp.float32)
    y = jax.random.normal(ky, (M, D), dtype=jnp.float32)

    scores = jax.block_until_ready(dot_scorer(x, y))
    ref = x @ y.T
    assert scores.shape == (N, M)
    assert jnp.allclose(scores, ref, atol=1e-5, rtol=1e-5), "mismatch vs reference"

    # Deliberately awkward shape: exercises alignment padding and ragged tile
    # edges (N not a multiple of 8, M not a multiple of 128, unaligned D).
    N2, M2, D2 = 77, 300, 160
    x2 = jax.random.normal(kx2, (N2, D2), dtype=jnp.float32)
    y2 = jax.random.normal(ky2, (M2, D2), dtype=jnp.float32)
    scores2 = jax.block_until_ready(dot_scorer(x2, y2))
    ref2 = x2 @ y2.T
    assert scores2.shape == (N2, M2)
    assert jnp.allclose(scores2, ref2, atol=1e-4, rtol=1e-4), "mismatch (awkward shape)"

    print("KERNEL_OK")
</pallas_src>

<mosaic_0001>
module attributes {stable_mosaic.version = 11 : i64} {
  func.func @_dot_kernel_single(%arg0: i32, %arg1: i32, %arg2: memref<8x32xf32, #tpu.memory_space<vmem>>, %arg3: memref<128x32xf32, #tpu.memory_space<vmem>>, %arg4: memref<8x128xf32, #tpu.memory_space<vmem>>) attributes {dimension_semantics = [#tpu.dimension_semantics<parallel>, #tpu.dimension_semantics<parallel>], iteration_bounds = array<i64: 1, 1>, scalar_prefetch = 0 : i64, scratch_operands = 0 : i64, tpu.core_type = #tpu.core_type<tc>, window_params = [{transform_indices = @transform_0, window_bounds = array<i64: 8, 32>}, {transform_indices = @transform_1, window_bounds = array<i64: 128, 32>}, {transform_indices = @transform_2, window_bounds = array<i64: 8, 128>}]} {
    %c0 = arith.constant 0 : index
    %c0_0 = arith.constant 0 : index
    %0 = vector.load %arg2[%c0, %c0_0] : memref<8x32xf32, #tpu.memory_space<vmem>>, vector<8x32xf32>
    %c0_1 = arith.constant 0 : index
    %c0_2 = arith.constant 0 : index
    %1 = vector.load %arg3[%c0_1, %c0_2] : memref<128x32xf32, #tpu.memory_space<vmem>>, vector<128x32xf32>
    %cst = arith.constant dense<0.000000e+00> : vector<8x128xf32>
    %2 = tpu.matmul %0, %1, %cst {dimension_numbers = #tpu.dot_dimension_numbers<[1], [1], [0], [0], [0, 0, 1, 0], [], []>} : vector<8x32xf32>, vector<128x32xf32>, vector<8x128xf32> -> vector<8x128xf32>
    %c0_3 = arith.constant 0 : index
    %c0_4 = arith.constant 0 : index
    %3 = vector.load %arg4[%c0_3, %c0_4] : memref<8x128xf32, #tpu.memory_space<vmem>>, vector<8x128xf32>
    tpu.vector_store %arg4[%c0_3, %c0_4], %2 {strides = array<i32>} : memref<8x128xf32, #tpu.memory_space<vmem>>, vector<8x128xf32>,
    return
  }
  func.func @transform_0(%arg0: i32, %arg1: i32) -> (i32, i32) {
    %c0_i32 = arith.constant 0 : i32
    %c0_i32_0 = arith.constant 0 : i32
    return %arg0, %c0_i32 : i32, i32
  }
  func.func @transform_1(%arg0: i32, %arg1: i32) -> (i32, i32) {
    %c0_i32 = arith.constant 0 : i32
    %c0_i32_0 = arith.constant 0 : i32
    return %arg1, %c0_i32 : i32, i32
  }
  func.func @transform_2(%arg0: i32, %arg1: i32) -> (i32, i32) {
    %c0_i32 = arith.constant 0 : i32
    return %arg0, %arg1 : i32, i32
  }
}

</mosaic_0001>

<bundles_post_ra>
// kernel: dot_scorer.1
= control target key start
LH: loop header
LB: loop body
LE: loop exit
PB: predicated region body
PF: predicated region fallthrough
CT: control target
= control target key end

     0   :  { %vm29_vm0 = vcmask 261120   ;;  %s249_s0 = inlined_call_operand.vmem [shape: f32[8,32], index: 0, kind: input, shape index: {}]   ;;  %s250_s1 = inlined_call_operand.vmem [shape: f32[128,32], index: 1, kind: input, shape index: {}]   ;;  %s251_s2 = inlined_call_operand.hbm [shape: f32[8,128], index: 2, kind: output, shape index: {}]  }
   0x1   :  { %v28_v0 = vld [vmem:[%s250_s1 + $0x78] sm:$0xff]  ;;  %v27_v1 = vld [vmem:[%s250_s1 + $0x70] sm:$0xff] }
   0x2   :  { %118 = vmatpush.xpose.msk.msra.mxu0 %vm29_vm0, %v28_v0 }
   0x3   :  { %7 = vsyncpa [#allocation3], 0  ;;  %v26_v2 = vld [vmem:[%s250_s1 + $0x68] sm:$0xff]  ;;  %v25_v3 = vld [vmem:[%s250_s1 + $0x60] sm:$0xff]  ;;  %s162_s15 = smov [#allocation2]   ;;  %s109_s19 = sshll.u32 %s251_s2, 4  ;;  %s110_s19 = int_to_ptr.hbm [resolvable:$true] %s109_s19 }
   0x4   :  { %v24_v4 = vld [vmem:[%s250_s1 + $0x58] sm:$0xff]  ;;  %v23_v5 = vld [vmem:[%s250_s1 + $0x50] sm:$0xff]  ;;  %v22_v6 = vld [vmem:[%s250_s1 + $0x48] sm:$0xff]  ;;  %s107_s16 = sshll.u32 %s162_s15, 4  ;;  %s108_s16 = int_to_ptr.vmem [resolvable:$true] %s107_s16 }
   0x5   :  { %v21_v7 = vld [vmem:[%s250_s1 + $0x40] sm:$0xff]  ;;  %v20_v8 = vld [vmem:[%s250_s1 + $0x38] sm:$0xff]  ;;  %v19_v9 = vld [vmem:[%s250_s1 + $0x30] sm:$0xff] }
   0x6   :  { %119 = vmatpush.xpose.msk.msra.mxu0 %vm29_vm0, %v27_v1  ;;  %v18_v10 = vld [vmem:[%s250_s1 + $0x28] sm:$0xff]  ;;  %v17_v11 = vld [vmem:[%s250_s1 + $0x20] sm:$0xff]  ;;  %v16_v12 = vld [vmem:[%s250_s1 + $0x18] sm:$0xff] }
   0x7   :  { %v15_v13 = vld [vmem:[%s250_s1 + $0x10] sm:$0xff]  ;;  %v14_v14 = vld [vmem:[%s250_s1 + $0x8] sm:$0xff]  ;;  %v13_v15 = vld [vmem:[%s250_s1] sm:$0xff] }
   0x8   :  { %v12_v16 = vld [vmem:[%s249_s0] sm:$0xff] }
   0xa   :  { %120 = vmatpush.xpose.msk.msra.mxu0 %vm29_vm0, %v26_v2 }
   0xe   :  { %121 = vmatpush.xpose.msk.msra.mxu0 %vm29_vm0, %v25_v3 }
  0x12   :  { %122 = vmatpush.xpose.msk.msra.mxu0 %vm29_vm0, %v24_v4 }
  0x16   :  { %123 = vmatpush.xpose.msk.msra.mxu0 %vm29_vm0, %v23_v5 }
  0x1a   :  { %124 = vmatpush.xpose.msk.msra.mxu0 %vm29_vm0, %v22_v6 }
  0x1e   :  { %125 = vmatpush.xpose.msk.msra.mxu0 %vm29_vm0, %v21_v7 }
  0x22   :  { %126 = vmatpush.xpose.msk.msra.mxu0 %vm29_vm0, %v20_v8 }
  0x26   :  { %127 = vmatpush.xpose.msk.msra.mxu0 %vm29_vm0, %v19_v9 }
  0x2a   :  { %128 = vmatpush.xpose.msk.msra.mxu0 %vm29_vm0, %v18_v10 }
  0x2e   :  { %129 = vmatpush.xpose.msk.msra.mxu0 %vm29_vm0, %v17_v11 }
  0x32   :  { %130 = vmatpush.xpose.msk.msra.mxu0 %vm29_vm0, %v16_v12 }
  0x36   :  { %131 = vmatpush.xpose.msk.msra.mxu0 %vm29_vm0, %v15_v13 }
  0x3a   :  { %132 = vmatpush.xpose.msk.msra.mxu0 %vm29_vm0, %v14_v14 }
  0x3e   :  { %133 = vmatpush.xpose.msk.msra.mxu0 %vm29_vm0, %v13_v15 }
  0x41   :  { %134 = vmatmul.msk.f32.vlgmr.msra.gmra.mxu0 %vm29_vm0, %v12_v16 }
  0xbe   :  { %v98_v17 = vpop.f32.mrf.mxu0 }
  0xbf   :  { %101 = vst [vmem:[#allocation2] sm:$0xff] %v98_v17 }
  0xc0   :  { %112 = dma.vmem_to_hbm [thread:$0]  %s108_s16, 128, %s110_s19, [#allocation3]  }
  0xc1   :  { %160 = dma.done.wait [#allocation3], 128  }
  0xc2   :  { %161 = vsyncadd [#allocation3], 4294967168 }
  0xc3   :  { %117 = vsyncpa [#allocation3], 1 }

</bundles_post_ra>
